<compile_context>
chip_gen: v6e
topology: v6e:2x2x1
jax: 0.10.0
libtpu: 0.0.40
codegen_flags: <defaults>
</compile_context>

<pallas_src>
import functools

import jax
import jax.numpy as jnp
from jax import lax
from jax.experimental import pallas as pl
from jax.experimental.pallas import tpu as pltpu

# dot_general dims for A (1, K) · B (N, K) -> (1, N)   (i.e. A @ B.T)
_DN_ABT = (((1,), (1,)), ((), ()))


def _mlp_predictor_kernel(x_ref, m_ref, w1m_ref, b1_ref, w2t_ref,
                          w3r0_ref, w3rt_ref, y_ref, *, mxu_dtype):
    """One batch tile: x/m are (TB, F); y_ref is a lane-dense (1, TB) row."""
    x = x_ref[...]                                   # (TB, F) f32
    m = m_ref[...]                                   # (TB, F) f32

    # --- 3-layer MLP on m_aug = [1, m]; the ones column is folded into b1. ---
    h = jnp.dot(m.astype(mxu_dtype), w1m_ref[...],
                preferred_element_type=jnp.float32) + b1_ref[...]
    h = jnp.maximum(h, 0.0)                          # (TB, D)
    h = jnp.dot(h.astype(mxu_dtype), w2t_ref[...],
                preferred_element_type=jnp.float32)
    h = jnp.maximum(h, 0.0)                          # (TB, D)

    #   alpha[:, 0]  -> computed directly as a (1, TB) row   (uses W3 row 0)
    #   alpha[:, 1:] -> (TB, F)                               (uses W3 rows 1:)
    h_c = h.astype(mxu_dtype)
    alpha0_row = lax.dot_general(w3r0_ref[...], h_c, _DN_ABT,
                                 preferred_element_type=jnp.float32)  # (1, TB)
    alpha_rest = jnp.dot(h_c, w3rt_ref[...],
                         preferred_element_type=jnp.float32)          # (TB, F)

    # --- Epilogue: y = alpha[:,0] + sum(alpha[:,1:] * x * m, axis=1). ---
    # Row reduction done as ones(1,F) @ prod.T on the MXU so the result lands
    # lane-dense (batch on lanes) with no sublane->lane reshape/transpose.
    prod = alpha_rest * (x * m)                                       # (TB, F)
    ones_f = jnp.ones((1, prod.shape[1]), jnp.float32)
    y_row = alpha0_row + lax.dot_general(ones_f, prod, _DN_ABT,
                                         preferred_element_type=jnp.float32)
    y_ref[...] = y_row                                                # (1, TB)


def prepare_params(w1, w2, w3, mxu_dtype=jnp.float32):
    """One-time weight layout prep (keep OUTSIDE the hot call path).

    PyTorch nn.Linear stores (out, in); the kernel wants row-major (in, out).
    W1's first input column becomes a bias (the folded ones column) and W3 is
    split into its first row (alpha[:,0] term) and the rest.
    """
    b1 = w1[:, 0:1].T.astype(jnp.float32)        # (1, D)  bias, kept f32
    w1m = w1[:, 1:].T.astype(mxu_dtype)          # (F, D)
    w2t = w2.T.astype(mxu_dtype)                 # (D, D)
    w3r0 = w3[0:1, :].astype(mxu_dtype)          # (1, D)
    w3rt = w3[1:, :].T.astype(mxu_dtype)         # (D, F)
    return w1m, b1, w2t, w3r0, w3rt


def _pick_batch_tile(batch):
    # Largest sublane-aligned power-of-two tile that divides the batch.
    # 2048 rows x F x 4B x 2 inputs x 2 pipeline buffers stays ~1-2 MiB for
    # typical F — safe on v5e (16 MiB scoped VMEM) and v7x (32 MiB default).
    for tb in (2048, 1024, 512, 256, 128, 64, 32, 16, 8):
        if batch % tb == 0:
            return tb
    return batch  # odd/small batch: single full tile.
    # TODO(synk): pad/mask the remainder tile for large batches not a multiple of 8.


@functools.partial(jax.jit, static_argnames=("mxu_dtype",))
def mlp_predictor_forward(x, m, params, mxu_dtype=jnp.float32):
    """x, m: (B, F) float32; params from prepare_params(). Returns (B,)."""
    w1m, b1, w2t, w3r0, w3rt = params
    B, F = x.shape
    D = F + 1
    TB = _pick_batch_tile(B)
    num_tiles = B // TB

    witem = jnp.dtype(mxu_dtype).itemsize
    cost = pl.CostEstimate(
        flops=2 * B * (F * D + D * D + D * F + D + F),
        transcendentals=0,
        bytes_accessed=(2 * B * F * 4                               # x, m
                        + (F * D + D * D + D * F + 2 * D) * witem   # weights
                        + B * 4),                                   # output
    )

    const = lambda shape: pl.BlockSpec(shape, lambda i: (0, 0))

    y_row = pl.pallas_call(
        functools.partial(_mlp_predictor_kernel, mxu_dtype=mxu_dtype),
        out_shape=jax.ShapeDtypeStruct((1, B), jnp.float32),
        grid=(num_tiles,),
        in_specs=[
            pl.BlockSpec((TB, F), lambda i: (i, 0)),   # x batch tile
            pl.BlockSpec((TB, F), lambda i: (i, 0)),   # m batch tile
            const((F, D)),                             # W1[:,1:].T  (VMEM-resident)
            const((1, D)),                             # b1 = W1[:,0]
            const((D, D)),                             # W2.T
            const((1, D)),                             # W3[0,:]
            const((D, F)),                             # W3[1:,:].T
        ],
        out_specs=pl.BlockSpec((1, TB), lambda i: (0, i)),   # lane-dense row
        compiler_params=pltpu.CompilerParams(
            dimension_semantics=("parallel",),
        ),
        cost_estimate=cost,
    )(x, m, w1m, b1, w2t, w3r0, w3rt)

    return y_row[0]                                     # (B,)


def _init_linear_weight(key, out_features, in_features):
    # Deterministic stand-in for nn.Linear's default kaiming-uniform init.
    bound = 1.0 / jnp.sqrt(jnp.float32(in_features))
    return jax.random.uniform(key, (out_features, in_features), jnp.float32,
                              minval=-bound, maxval=bound)


if __name__ == "__main__":
    key = jax.random.PRNGKey(0)
    k_x, k_m, k_w1, k_w2, k_w3 = jax.random.split(key, 5)

    B = 8
    num_feature = 31            # D = num_feature + 1 = 32
    D = num_feature + 1

    x = jax.random.normal(k_x, (B, num_feature), jnp.float32)
    m = (jax.random.uniform(k_m, (B, num_feature)) > 0.5).astype(jnp.float32)

    w1 = _init_linear_weight(k_w1, D, D)
    w2 = _init_linear_weight(k_w2, D, D)
    w3 = _init_linear_weight(k_w3, D, D)

    # Pure-JAX reference of the PyTorch forward.
    ones = jnp.ones((B, 1), jnp.float32)
    x_aug = jnp.concatenate([ones, x], axis=1)
    m_aug = jnp.concatenate([ones, m], axis=1)
    h = jnp.maximum(m_aug @ w1.T, 0.0)
    h = jnp.maximum(h @ w2.T, 0.0)
    alpha = h @ w3.T
    y_ref = jnp.sum(alpha * x_aug * m_aug, axis=1)

    # f32 MXU path (tight check; use this on v5e or when accuracy is critical).
    params_f32 = prepare_params(w1, w2, w3, mxu_dtype=jnp.float32)
    y_f32 = jax.block_until_ready(mlp_predictor_forward(x, m, params_f32))
    assert y_f32.shape == (B,)
    assert jnp.allclose(y_f32, y_ref, atol=1e-4, rtol=1e-4), (y_f32, y_ref)

    # bf16 MXU path (f32 accumulation) — recommended v6e/v7x configuration.
    params_bf16 = prepare_params(w1, w2, w3, mxu_dtype=jnp.bfloat16)
    y_bf16 = jax.block_until_ready(
        mlp_predictor_forward(x, m, params_bf16, mxu_dtype=jnp.bfloat16))
    assert jnp.allclose(y_bf16, y_ref, atol=1e-1, rtol=1e-1), (y_bf16, y_ref)

    print("KERNEL_OK")
</pallas_src>

<mosaic_0001>
module attributes {stable_mosaic.version = 11 : i64} {
  func.func @_mlp_predictor_kernel(%arg0: i32, %arg1: memref<8x31xf32, #tpu.memory_space<vmem>>, %arg2: memref<8x31xf32, #tpu.memory_space<vmem>>, %arg3: memref<31x32xf32, #tpu.memory_space<vmem>>, %arg4: memref<1x32xf32, #tpu.memory_space<vmem>>, %arg5: memref<32x32xf32, #tpu.memory_space<vmem>>, %arg6: memref<1x32xf32, #tpu.memory_space<vmem>>, %arg7: memref<32x31xf32, #tpu.memory_space<vmem>>, %arg8: memref<1x8xf32, #tpu.memory_space<vmem>>) attributes {dimension_semantics = [#tpu.dimension_semantics<parallel>], iteration_bounds = array<i64: 1>, scalar_prefetch = 0 : i64, scratch_operands = 0 : i64, tpu.core_type = #tpu.core_type<tc>, window_params = [{transform_indices = @transform_0, window_bounds = array<i64: 8, 31>}, {transform_indices = @transform_1, window_bounds = array<i64: 8, 31>}, {pipeline_mode = #tpu.pipeline_mode<synchronous>, transform_indices = @transform_2, window_bounds = array<i64: 31, 32>}, {pipeline_mode = #tpu.pipeline_mode<synchronous>, transform_indices = @transform_3, window_bounds = array<i64: 1, 32>}, {pipeline_mode = #tpu.pipeline_mode<synchronous>, transform_indices = @transform_4, window_bounds = array<i64: 32, 32>}, {pipeline_mode = #tpu.pipeline_mode<synchronous>, transform_indices = @transform_5, window_bounds = array<i64: 1, 32>}, {pipeline_mode = #tpu.pipeline_mode<synchronous>, transform_indices = @transform_6, window_bounds = array<i64: 32, 31>}, {transform_indices = @transform_7, window_bounds = array<i64: 1, 8>}]} {
    %c0 = arith.constant 0 : index
    %c0_0 = arith.constant 0 : index
    %0 = vector.load %arg1[%c0, %c0_0] : memref<8x31xf32, #tpu.memory_space<vmem>>, vector<8x31xf32>
    %c0_1 = arith.constant 0 : index
    %c0_2 = arith.constant 0 : index
    %1 = vector.load %arg2[%c0_1, %c0_2] : memref<8x31xf32, #tpu.memory_space<vmem>>, vector<8x31xf32>
    %c0_3 = arith.constant 0 : index
    %c0_4 = arith.constant 0 : index
    %2 = vector.load %arg3[%c0_3, %c0_4] : memref<31x32xf32, #tpu.memory_space<vmem>>, vector<31x32xf32>
    %cst = arith.constant dense<0.000000e+00> : vector<8x32xf32>
    %3 = tpu.matmul %1, %2, %cst {dimension_numbers = #tpu.dot_dimension_numbers<[1], [0], [0], [1], [0, 0, 1, 1], [], []>} : vector<8x31xf32>, vector<31x32xf32>, vector<8x32xf32> -> vector<8x32xf32>
    %c0_5 = arith.constant 0 : index
    %c0_6 = arith.constant 0 : index
    %4 = vector.load %arg4[%c0_5, %c0_6] : memref<1x32xf32, #tpu.memory_space<vmem>>, vector<1x32xf32>
    %5 = vector.broadcast %4 : vector<1x32xf32> to vector<8x32xf32>
    %6 = arith.addf %3, %5 : vector<8x32xf32>
    %cst_7 = arith.constant 0.000000e+00 : f32
    %7 = vector.broadcast %cst_7 : f32 to vector<8x32xf32>
    %8 = arith.maximumf %6, %7 : vector<8x32xf32>
    %c0_8 = arith.constant 0 : index
    %c0_9 = arith.constant 0 : index
    %9 = vector.load %arg5[%c0_8, %c0_9] : memref<32x32xf32, #tpu.memory_space<vmem>>, vector<32x32xf32>
    %cst_10 = arith.constant dense<0.000000e+00> : vector<8x32xf32>
    %10 = tpu.matmul %8, %9, %cst_10 {dimension_numbers = #tpu.dot_dimension_numbers<[1], [0], [0], [1], [0, 0, 1, 1], [], []>} : vector<8x32xf32>, vector<32x32xf32>, vector<8x32xf32> -> vector<8x32xf32>
    %cst_11 = arith.constant 0.000000e+00 : f32
    %11 = vector.broadcast %cst_11 : f32 to vector<8x32xf32>
    %12 = arith.maximumf %10, %11 : vector<8x32xf32>
    %c0_12 = arith.constant 0 : index
    %c0_13 = arith.constant 0 : index
    %13 = vector.load %arg6[%c0_12, %c0_13] : memref<1x32xf32, #tpu.memory_space<vmem>>, vector<1x32xf32>
    %cst_14 = arith.constant dense<0.000000e+00> : vector<1x8xf32>
    %14 = tpu.matmul %13, %12, %cst_14 {dimension_numbers = #tpu.dot_dimension_numbers<[1], [1], [0], [0], [0, 0, 1, 0], [], []>} : vector<1x32xf32>, vector<8x32xf32>, vector<1x8xf32> -> vector<1x8xf32>
    %c0_15 = arith.constant 0 : index
    %c0_16 = arith.constant 0 : index
    %15 = vector.load %arg7[%c0_15, %c0_16] : memref<32x31xf32, #tpu.memory_space<vmem>>, vector<32x31xf32>
    %cst_17 = arith.constant dense<0.000000e+00> : vector<8x31xf32>
    %16 = tpu.matmul %12, %15, %cst_17 {dimension_numbers = #tpu.dot_dimension_numbers<[1], [0], [0], [1], [0, 0, 1, 1], [], []>} : vector<8x32xf32>, vector<32x31xf32>, vector<8x31xf32> -> vector<8x31xf32>
    %17 = arith.mulf %0, %1 : vector<8x31xf32>
    %18 = arith.mulf %16, %17 : vector<8x31xf32>
    %cst_18 = arith.constant 1.000000e+00 : f32
    %19 = vector.broadcast %cst_18 : f32 to vector<1x31xf32>
    %cst_19 = arith.constant dense<0.000000e+00> : vector<1x8xf32>
    %20 = tpu.matmul %19, %18, %cst_19 {dimension_numbers = #tpu.dot_dimension_numbers<[1], [1], [0], [0], [0, 0, 1, 0], [], []>} : vector<1x31xf32>, vector<8x31xf32>, vector<1x8xf32> -> vector<1x8xf32>
    %21 = arith.addf %14, %20 : vector<1x8xf32>
    %c0_20 = arith.constant 0 : index
    %c0_21 = arith.constant 0 : index
    %22 = vector.load %arg8[%c0_20, %c0_21] : memref<1x8xf32, #tpu.memory_space<vmem>>, vector<1x8xf32>
    tpu.vector_store %arg8[%c0_20, %c0_21], %21 {strides = array<i32>} : memref<1x8xf32, #tpu.memory_space<vmem>>, vector<1x8xf32>,
    return
  }
  func.func @transform_0(%arg0: i32) -> (i32, i32) {
    %c0_i32 = arith.constant 0 : i32
    %c0_i32_0 = arith.constant 0 : i32
    return %arg0, %c0_i32 : i32, i32
  }
  func.func @transform_1(%arg0: i32) -> (i32, i32) {
    %c0_i32 = arith.constant 0 : i32
    %c0_i32_0 = arith.constant 0 : i32
    return %arg0, %c0_i32 : i32, i32
  }
  func.func @transform_2(%arg0: i32) -> (i32, i32) {
    %c0_i32 = arith.constant 0 : i32
    %c0_i32_0 = arith.constant 0 : i32
    %c0_i32_1 = arith.constant 0 : i32
    return %c0_i32, %c0_i32_0 : i32, i32
  }
  func.func @transform_3(%arg0: i32) -> (i32, i32) {
    %c0_i32 = arith.constant 0 : i32
    %c0_i32_0 = arith.constant 0 : i32
    %c0_i32_1 = arith.constant 0 : i32
    return %c0_i32, %c0_i32_0 : i32, i32
  }
  func.func @transform_4(%arg0: i32) -> (i32, i32) {
    %c0_i32 = arith.constant 0 : i32
    %c0_i32_0 = arith.constant 0 : i32
    %c0_i32_1 = arith.constant 0 : i32
    return %c0_i32, %c0_i32_0 : i32, i32
  }
  func.func @transform_5(%arg0: i32) -> (i32, i32) {
    %c0_i32 = arith.constant 0 : i32
    %c0_i32_0 = arith.constant 0 : i32
    %c0_i32_1 = arith.constant 0 : i32
    return %c0_i32, %c0_i32_0 : i32, i32
  }
  func.func @transform_6(%arg0: i32) -> (i32, i32) {
    %c0_i32 = arith.constant 0 : i32
    %c0_i32_0 = arith.constant 0 : i32
    %c0_i32_1 = arith.constant 0 : i32
    return %c0_i32, %c0_i32_0 : i32, i32
  }
  func.func @transform_7(%arg0: i32) -> (i32, i32) {
    %c0_i32 = arith.constant 0 : i32
    %c0_i32_0 = arith.constant 0 : i32
    return %c0_i32, %arg0 : i32, i32
  }
}

</mosaic_0001>

<bundles_post_ra>
// kernel: mlp_predictor_forward.1
= control target key start
LH: loop header
LB: loop body
LE: loop exit
PB: predicated region body
PF: predicated region fallthrough
CT: control target
= control target key end

     0   :  { %12 = vsyncpa [#allocation3], 0  ;;  %s835_s0 = inlined_call_operand.hbm [shape: f32[8,31], index: 0, kind: input, shape index: {}]   ;;  %s836_s1 = inlined_call_operand.hbm [shape: f32[8,31], index: 1, kind: input, shape index: {}]   ;;  %s837_s2 = inlined_call_operand.hbm [shape: f32[31,32], index: 2, kind: input, shape index: {}]   ;;  %s838_s3 = inlined_call_operand.vmem [shape: f32[1,32], index: 3, kind: input, shape index: {}]   ;;  %s839_s4 = inlined_call_operand.hbm [shape: f32[32,32], index: 4, kind: input, shape index: {}]   ;;  %s840_s5 = inlined_call_operand.vmem [shape: f32[1,32], index: 5, kind: input, shape index: {}]   ;;  %s841_s6 = inlined_call_operand.hbm [shape: f32[32,31], index: 6, kind: input, shape index: {}]   ;;  %s842_s7 = inlined_call_operand.hbm [shape: f32[1,8], index: 7, kind: output, shape index: {}]  }
   0x1   :  { %13 = vsyncpa [#allocation6], 0 }
   0x2   :  { %14 = vsyncpa [#allocation9], 0 }
   0x3   :  { %15 = vsyncpa [#allocation4], 0  ;;  %s720_s24 = smov [#allocation5]  }
   0x4   :  { %s32_s25 = sshll.u32 %s720_s24, 4  ;;  %s33_s25 = int_to_ptr.vmem [resolvable:$true] %s32_s25 }
   0x5   :  { %s600_s26 = scalar_lea.vmem %s33_s25, 128  ;;  %p605_p1 = scmp.lt.s32.totalorder %s33_s25, %s33_s25 }
   0x6   :  { %p601_p0 = scmp.ne.s32.totalorder %s33_s25, %s600_s26  ;;  %p606_p2 = scmp.lt.s32.totalorder %s600_s26, %s600_s26 }
   0x8   :  { %p607_p3 = por %p606_p2, %p605_p1 }
   0xa   :  { %p608_p4 = pnand %p607_p3, %p601_p0 }
   0xc   :  { %611 = shalt.err (!%p608_p4)
}
   0xd   :  { %35 = dma.hbm_to_vmem [thread:$0]  %s836_s1, 128, %s33_s25, [#allocation6]  }
   0xe   :  { %s721_s29 = smov [#allocation8]   ;;  %s722_s8 = smov [#allocation2]  }
   0xf   :  { %s55_s30 = sshll.u32 %s721_s29, 4  ;;  %s22_s9 = sshll.u32 %s722_s8, 4  ;;  %s56_s30 = int_to_ptr.vmem [resolvable:$true] %s55_s30  ;;  %s23_s9 = int_to_ptr.vmem [resolvable:$true] %s22_s9 }
  0x10   :  { %s620_s10 = scalar_lea.vmem %s56_s30, 512  ;;  %p625_p6 = scmp.lt.s32.totalorder %s56_s30, %s56_s30 }
  0x11   :  { %p621_p5 = scmp.ne.s32.totalorder %s56_s30, %s620_s10  ;;  %p626_p7 = scmp.lt.s32.totalorder %s620_s10, %s620_s10 }
  0x13   :  { %p627_p8 = por %p626_p7, %p625_p6 }
  0x15   :  { %p628_p9 = pnand %p627_p8, %p621_p5 }
  0x17   :  { %631 = shalt.err (!%p628_p9)
}
  0x18   :  { %s723_s11 = smov 128   ;;  %s724_s12 = smov 8  }
  0x19   :  { %61 = dma.hbm_to_vmem [thread:$0]  %s839_s4, 512, %s56_s30, [#allocation9], %s723_s11, %s723_s11, %s724_s12  }
  0x1a   :  { %s640_s1 = scalar_lea.vmem %s23_s9, 128  ;;  %p645_p11 = scmp.lt.s32.totalorder %s23_s9, %s23_s9 }
  0x1b   :  { %p641_p10 = scmp.ne.s32.totalorder %s23_s9, %s640_s1  ;;  %p646_p12 = scmp.lt.s32.totalorder %s640_s1, %s640_s1 }
  0x1d   :  { %p647_p13 = por %p646_p12, %p645_p11 }
  0x1f   :  { %p648_p0 = pnand %p647_p13, %p641_p10 }
  0x21   :  { %651 = shalt.err (!%p648_p0)
}
  0x22   :  { %25 = dma.hbm_to_vmem [thread:$0]  %s835_s0, 128, %s23_s9, [#allocation3]  }
  0x23   :  { %s725_s17 = smov [#allocation7]   ;;  %s726_s19 = smov [#allocation10]  }
  0x24   :  { %s41_s18 = sshll.u32 %s725_s17, 4  ;;  %s69_s20 = sshll.u32 %s726_s19, 4  ;;  %s42_s18 = int_to_ptr.vmem [resolvable:$true] %s41_s18  ;;  %s70_s20 = int_to_ptr.vmem [resolvable:$true] %s69_s20 }
  0x25   :  { %s660_s21 = scalar_lea.vmem %s42_s18, 512  ;;  %p665_p2 = scmp.lt.s32.totalorder %s42_s18, %s42_s18 }
  0x26   :  { %p661_p1 = scmp.ne.s32.totalorder %s42_s18, %s660_s21  ;;  %p666_p3 = scmp.lt.s32.totalorder %s660_s21, %s660_s21 }
  0x28   :  { %p667_p4 = por %p666_p3, %p665_p2 }
  0x2a   :  { %p668_p5 = pnand %p667_p4, %p661_p1 }
  0x2c   :  { %671 = shalt.err (!%p668_p5)
}
  0x2d   :  { %47 = dma.hbm_to_vmem [thread:$0]  %s837_s2, 512, %s42_s18, [#allocation6], %s723_s11, %s723_s11, %s724_s12  }
  0x2e   :  { %s680_s0 = scalar_lea.vmem %s70_s20, 512  ;;  %p685_p7 = scmp.lt.s32.totalorder %s70_s20, %s70_s20 }
  0x2f   :  { %p681_p6 = scmp.ne.s32.totalorder %s70_s20, %s680_s0  ;;  %p686_p8 = scmp.lt.s32.totalorder %s680_s0, %s680_s0 }
  0x31   :  { %p687_p9 = por %p686_p8, %p685_p7 }
  0x33   :  { %p688_p10 = pnand %p687_p9, %p681_p6 }
  0x35   :  { %691 = shalt.err (!%p688_p10)
}
  0x36   :  { %75 = dma.hbm_to_vmem [thread:$0]  %s841_s6, 512, %s70_s20, [#allocation9], %s723_s11, %s723_s11, %s724_s12  }
  0x37   :  { %712 = dma.done.wait [#allocation3], 128  }
  0x38   :  { %713 = vsyncadd [#allocation3], 4294967168 }
  0x39   :  { %714 = dma.done.wait [#allocation6], 640  }
  0x3a   :  { %715 = vsyncadd [#allocation6], 4294966656 }
  0x3b   :  { %716 = dma.done.wait [#allocation9], 1024  }
  0x3c   :  { %717 = vsyncadd [#allocation9], 4294966272  ;;  %v727_v0 = vmov 0.0   ;;  %vm728_vm0 = vmmov 0   ;;  %vm108_vm1 = vcmask 1046528   ;;  %v95_v2 = vld [vmem:[#allocation7 + $0x10] sm:$0xff] }
  0x3d   :  { %538 = vmatprep.subr.mxu0 %v727_v0  ;;  %546 = vmatprep.mubr.msk.f32.mxu0 %vm728_vm0, %v727_v0  ;;  %v96_v1 = vld [vmem:[#allocation7 + $0x18] sm:$0x7f]  ;;  %v94_v4 = vld [vmem:[#allocation7 + $0x8] sm:$0xff]  ;;  %v93_v5 = vld [vmem:[#allocation7] sm:$0xff]  ;;  %vm104_vm2 = vcmask 252928   ;;  %vm187_vm3 = vcmask 261120  }
  0x3e   :  { %549 = vmatprep.subr.mxu1 %v727_v0  ;;  %557 = vmatprep.mubr.msk.f32.mxu1 %vm728_vm0, %v727_v0  ;;  %v186_v3 = vld [vmem:[#allocation8 + $0x18] sm:$0xff]  ;;  %v185_v7 = vld [vmem:[#allocation8 + $0x10] sm:$0xff]  ;;  %v184_v8 = vld [vmem:[#allocation8 + $0x8] sm:$0xff]  ;;  %v729_v27 = vmov 1.0   ;;  %s730_s26 = smov [#allocation11]   ;;  %vm491_vm4 = vcmask 57344  }
  0x3f   :  { %539 = vmatpush3.msk.msra.mxu0 %vm108_vm1, %v96_v1  ;;  %550 = vmatpush3.msra.mxu1 %v186_v3  ;;  %v92_v6 = vld [vmem:[#allocation5] sm:$0xff]  ;;  %v183_v9 = vld [vmem:[#allocation8] sm:$0xff]  ;;  %v265_v11 = vld [vmem:[#allocation10 + $0x10] sm:$0xff]  ;;  %s499_s27 = sshll.u32 %s730_s26, 4  ;;  %s500_s27 = int_to_ptr.vmem [resolvable:$true] %s499_s27 }
  0x40   :  { %540 = vmatprep.subr.mxu0 %v727_v0  ;;  %551 = vmatprep.subr.mxu1 %v727_v0  ;;  %v266_v10 = vld [vmem:[#allocation10 + $0x18] sm:$0xff]  ;;  %v510_v12 = vld [vmem:[%s838_s3] ss:$0 sm:$0xff]  ;;  %v264_v17 = vld [vmem:[#allocation10 + $0x8] sm:$0xff]  ;;  %s692_s28 = scalar_lea.vmem %s500_s27, 16  ;;  %s696_s29 = scalar_lea.vmem %s500_s27, 32 }
  0x41   :  { %541 = vmatpush3.msra.mxu0 %v95_v2  ;;  %552 = vmatpush3.msra.mxu1 %v185_v7  ;;  %v263_v18 = vld [vmem:[#allocation10] sm:$0xff]  ;;  %v91_v22 = vld [vmem:[#allocation2] sm:$0xff]  ;;  %p693_p11 = scmp.ne.s32.totalorder %s500_s27, %s692_s28  ;;  %p697_p12 = scmp.lt.s32.totalorder %s500_s27, %s500_s27 }
  0x42   :  { %542 = vmatprep.subr.mxu0 %v727_v0  ;;  %553 = vmatprep.subr.mxu1 %v727_v0  ;;  %v340_v23 = vmul.f32 %v92_v6, %v91_v22  ;;  %v262_v28 = vld [vmem:[%s840_s5] sm:$0x1]  ;;  %p698_p13 = scmp.lt.s32.totalorder %s696_s29, %s692_s28 }
  0x43   :  { %543 = vmatpush3.msra.mxu0 %v94_v4  ;;  %554 = vmatpush3.msra.mxu1 %v184_v8 }
  0x44   :  { %544 = vmatprep.subr.mxu0 %v727_v0  ;;  %555 = vmatprep.subr.mxu1 %v727_v0  ;;  %p699_p0 = por %p698_p13, %p697_p12 }
  0x45   :  { %545 = vmatpush3.msra.mxu0 %v93_v5  ;;  %556 = vmatpush3.msra.mxu1 %v183_v9 }
  0x46   :  { %547 = vmatmul.mubr.msk.f32.vlgmr.msra.gmra.mxu0 %vm104_vm2, %v92_v6  ;;  %560 = vmatprep.subr.mxu0 %v727_v0  ;;  %p700_p1 = pnand %p699_p0, %p693_p11 }
  0x47   :  { %568 = vmatprep.mubr.msk.f32.mxu0 %vm728_vm0, %v727_v0  ;;  %571 = vmatprep.subr.mxu1 %v727_v0 }
  0x48   :  { %561 = vmatpush3.msra.mxu0 %v266_v10 }
  0x49   :  { %562 = vmatprep.subr.mxu0 %v727_v0 }
  0x4a   :  { %563 = vmatpush3.msra.mxu0 %v265_v11 }
  0x4b   :  { %564 = vmatprep.subr.mxu0 %v727_v0 }
  0x4c   :  { %565 = vmatpush3.msra.mxu0 %v264_v17 }
  0x4d   :  { %566 = vmatprep.subr.mxu0 %v727_v0 }
  0x4e   :  { %567 = vmatpush3.msra.mxu0 %v263_v18 }
 0x106   :  { %v178_v13 = vpop.f32.mrf.mxu0 }
 0x107   :  { %v179_v14 = vadd.f32 %v510_v12, %v178_v13 }
 0x108   :  { %v548_v15 = vpop.f32.mrf.mxu0 }
 0x109   :  { %v182_v16 = vmax.f32 %v179_v14, 0.0 }
 0x10b   :  { %558 = vmatmul.mubr.msk.f32.vlgmr.msra.gmra.mxu1 %vm187_vm3, %v182_v16 }
 0x10c   :  { %573 = vmatprep.mubr.msk.f32.mxu1 %vm728_vm0, %v727_v0 }
 0x1cb   :  { %v257_v19 = vpop.f32.mrf.mxu1 }
 0x1cc   :  { %v261_v20 = vmax.f32 %v257_v19, 0.0 }
 0x1cd   :  { %v559_v21 = vpop.f32.mrf.mxu1 }
 0x1ce   :  { %569 = vmatmul.mubr.msk.f32.vlgmr.msra.gmra.mxu0 %vm187_vm3, %v261_v20 }
 0x28e   :  { %v336_v24 = vpop.f32.mrf.mxu0 }
 0x28f   :  { %v341_v25 = vmul.f32 %v340_v23, %v336_v24 }
 0x290   :  { %v570_v26 = vpop.f32.mrf.mxu0 }
 0x291   :  { %572 = vmatpush3.xpose.msk.msra.mxu1 %vm104_vm2, %v341_v25 }
 0x292   :  { %576 = vmatprep.subr.mxu1 %v727_v0 }
 0x294   :  { %574 = vmatmul.mubr.msk.f32.vlgmr.msra.gmra.mxu1 %vm104_vm2, %v729_v27 }
 0x295   :  { %577 = vmatpush3.xpose.msk.msra.mxu1 %vm187_vm3, %v261_v20  ;;  %578 = vmatprep.mubr.msk.f32.mxu1 %vm728_vm0, %v727_v0 }
 0x298   :  { %579 = vmatmul.mubr.msk.f32.vlgmr.msra.gmra.mxu1 %vm187_vm3, %v262_v28 }
 0x354   :  { %v414_v29 = vpop.f32.mrf.mxu1 }
 0x356   :  { %v575_v30 = vpop.f32.mrf.mxu1 }
 0x358   :  { %v487_v31 = vpop.f32.mrf.mxu1 }
 0x359   :  { %v488_v32 = vadd.f32 %v487_v31, %v414_v29 }
 0x35a   :  { %v580_v33 = vpop.f32.mrf.mxu1 }
 0x35b   :  { %492 = vst.msk [vmem:[#allocation11] sm:$0x1] %vm491_vm4, %v488_v32 }
 0x35c   :  { %703 = shalt.err (!%p700_p1)
}
 0x35d   :  { %502 = dma.vmem_to_hbm [thread:$0]  %s500_s27, 16, %s842_s7, [#allocation4]  }
 0x35e   :  { %718 = dma.done.wait [#allocation4], 16  }
 0x35f   :  { %719 = vsyncadd [#allocation4], 4294967280 }
 0x360   :  { %506 = vsyncpa [#allocation3], 1 }
 0x361   :  { %507 = vsyncpa [#allocation6], 1 }
 0x362   :  { %508 = vsyncpa [#allocation9], 1 }
 0x363   :  { %509 = vsyncpa [#allocation4], 1 }

</bundles_post_ra>
